<compile_context>
chip_gen: v5e
topology: v5e:2x2
jax: 0.10.0
libtpu: 0.0.40
codegen_flags: <defaults>
</compile_context>

<pallas_src>
import math

import jax
import jax.numpy as jnp
from jax.experimental import pallas as pl
from jax.experimental.pallas import tpu as pltpu

_PAD = 128          # lane-dense width for all hidden layers / input
_OUT = 64           # true output width of layer_5
_NUM_LAYERS = 4


def _policy_net_kernel(x_ref, w_ref, b_ref, o_ref):
    # x_ref: (tile, 128) f32; w_ref: (4, 128, 128) bf16 (VMEM-resident);
    # b_ref: (4, 128) f32;   o_ref: (tile, 64) f32.
    # Fully fused: 4 MXU matmuls (bf16 in, f32 accumulate) + bias + ReLU (VPU).
    # The layer loop is a static Python loop, unrolled at trace time.
    h = x_ref[...]                                   # f32 (tile, 128)
    for layer in range(_NUM_LAYERS):
        w = w_ref[layer]                             # (128, 128), static index
        b = b_ref[layer:layer + 1, :]                # (1, 128) f32, broadcasts
        acc = jnp.dot(h.astype(w.dtype), w,
                      preferred_element_type=jnp.float32) + b
        h = jnp.maximum(acc, 0.0)                    # ReLU in f32
    o_ref[...] = h[:, :_OUT].astype(o_ref.dtype)     # drop zero-padded columns


def prepare_params(params, compute_dtype=jnp.bfloat16):
    """One-time packing of PyTorch-convention (out, in) weights.

    Returns (W, Bias):
      W    : (4, 128, 128) compute_dtype, each layer transposed to (in, out)
             and zero-padded to 128x128 (zero pads keep the math exact).
      Bias : (4, 128) float32, zero-padded.
    """
    def pad_w(w):
        wt = w.T
        fi, fo = wt.shape
        return jnp.pad(wt, ((0, _PAD - fi), (0, _PAD - fo))).astype(compute_dtype)

    def pad_b(b):
        return jnp.pad(b, (0, _PAD - b.shape[0])).astype(jnp.float32)

    W = jnp.stack([pad_w(params["w1"]), pad_w(params["w2"]),
                   pad_w(params["w3"]), pad_w(params["w5"])])
    Bias = jnp.stack([pad_b(params["b1"]), pad_b(params["b2"]),
                      pad_b(params["b3"]), pad_b(params["b5"])])
    return W, Bias


def policy_net_forward(x, packed_params, *, batch_tile=1024,
                       min_parallel_steps=2):
    """x: (B, 128) float32. packed_params: output of prepare_params()."""
    W, Bias = packed_params
    B, D_in = x.shape
    assert D_in == _PAD

    # --- step-balanced batch tiling -----------------------------------------
    num_steps = pl.cdiv(B, batch_tile)
    if B > 8:
        # v7x has 2 TensorCores; give the "parallel" grid >= 2 steps so both
        # get work (negligible cost on v5e/v6e: one extra ~0.35us step).
        num_steps = max(num_steps, min_parallel_steps)
    tile = max(8, ((pl.cdiv(B, num_steps) + 7) // 8) * 8)   # multiple of 8 rows
    num_steps = pl.cdiv(B, tile)
    B_pad = num_steps * tile
    x_p = x if B_pad == B else jnp.pad(x, ((0, B_pad - B), (0, 0)))

    out = pl.pallas_call(
        _policy_net_kernel,
        out_shape=jax.ShapeDtypeStruct((B_pad, _OUT), jnp.float32),
        grid=(num_steps,),
        in_specs=[
            pl.BlockSpec((tile, _PAD), lambda i: (i, 0)),               # x tile
            pl.BlockSpec((_NUM_LAYERS, _PAD, _PAD), lambda i: (0, 0, 0)),  # W (resident)
            pl.BlockSpec((_NUM_LAYERS, _PAD), lambda i: (0, 0)),           # biases
        ],
        out_specs=pl.BlockSpec((tile, _OUT), lambda i: (i, 0)),
        compiler_params=pltpu.CompilerParams(
            dimension_semantics=("parallel",)),
    )(x_p, W, Bias)

    return out if B_pad == B else out[:B]


def init_params(key):
    """Deterministic init mimicking nn.Linear default: U(-1/sqrt(fan_in), +)."""
    dims = [("w1", "b1", 128, 84),
            ("w2", "b2", 84, 84),
            ("w3", "b3", 84, 84),
            ("w5", "b5", 84, 64)]
    params = {}
    for wname, bname, fan_in, fan_out in dims:
        key, kw, kb = jax.random.split(key, 3)
        bound = 1.0 / math.sqrt(fan_in)
        # PyTorch convention: weight shape (out_features, in_features).
        params[wname] = jax.random.uniform(
            kw, (fan_out, fan_in), jnp.float32, -bound, bound)
        params[bname] = jax.random.uniform(
            kb, (fan_out,), jnp.float32, -bound, bound)
    return params


def policy_net_reference(x, params):
    h = x
    for wname, bname in (("w1", "b1"), ("w2", "b2"), ("w3", "b3"), ("w5", "b5")):
        h = jnp.maximum(h @ params[wname].T + params[bname], 0.0)
    return h


if __name__ == "__main__":
    key = jax.random.PRNGKey(0)
    kp, kx = jax.random.split(key)
    params = init_params(kp)
    packed = prepare_params(params)          # one-time packing (bf16 weights)

    # bf16 weights/activations on the MXU -> relaxed tolerance vs f32 reference.
    TOL = 2e-2

    # Small primary test: whole batch in a single grid step.
    B = 8
    x = jax.random.normal(kx, (B, 128), jnp.float32)
    out = jax.block_until_ready(policy_net_forward(x, packed))
    ref = policy_net_reference(x, params)
    assert out.shape == (B, 64), out.shape
    assert jnp.allclose(out, ref, atol=TOL, rtol=TOL), \
        float(jnp.max(jnp.abs(out - ref)))

    # Exercise the step-balanced / multi-step-grid / ragged-padding path.
    B2 = 20
    x2 = jax.random.normal(jax.random.PRNGKey(1), (B2, 128), jnp.float32)
    out2 = jax.block_until_ready(policy_net_forward(x2, packed, batch_tile=8))
    ref2 = policy_net_reference(x2, params)
    assert out2.shape == (B2, 64), out2.shape
    assert jnp.allclose(out2, ref2, atol=TOL, rtol=TOL), \
        float(jnp.max(jnp.abs(out2 - ref2)))

    print("KERNEL_OK")
</pallas_src>

<mosaic_0001>
module attributes {stable_mosaic.version = 11 : i64} {
  func.func @_policy_net_kernel(%arg0: i32, %arg1: memref<8x128xf32, #tpu.memory_space<vmem>>, %arg2: memref<4x128x128xbf16, #tpu.memory_space<vmem>>, %arg3: memref<4x128xf32, #tpu.memory_space<vmem>>, %arg4: memref<8x64xf32, #tpu.memory_space<vmem>>) attributes {dimension_semantics = [#tpu.dimension_semantics<parallel>], iteration_bounds = array<i64: 1>, scalar_prefetch = 0 : i64, scratch_operands = 0 : i64, tpu.core_type = #tpu.core_type<tc>, window_params = [{transform_indices = @transform_0, window_bounds = array<i64: 8, 128>}, {pipeline_mode = #tpu.pipeline_mode<synchronous>, transform_indices = @transform_1, window_bounds = array<i64: 4, 128, 128>}, {pipeline_mode = #tpu.pipeline_mode<synchronous>, transform_indices = @transform_2, window_bounds = array<i64: 4, 128>}, {transform_indices = @transform_3, window_bounds = array<i64: 8, 64>}]} {
    %c0 = arith.constant 0 : index
    %c0_0 = arith.constant 0 : index
    %0 = vector.load %arg1[%c0, %c0_0] : memref<8x128xf32, #tpu.memory_space<vmem>>, vector<8x128xf32>
    %c0_1 = arith.constant 0 : index
    %c0_2 = arith.constant 0 : index
    %c0_3 = arith.constant 0 : index
    %1 = vector.load %arg2[%c0_1, %c0_2, %c0_3] : memref<4x128x128xbf16, #tpu.memory_space<vmem>>, vector<1x128x128xbf16>
    %2 = vector.shape_cast %1 : vector<1x128x128xbf16> to vector<128x128xbf16>
    %c0_4 = arith.constant 0 : index
    %c0_5 = arith.constant 0 : index
    %3 = vector.load %arg3[%c0_4, %c0_5] : memref<4x128xf32, #tpu.memory_space<vmem>>, vector<1x128xf32>
    %4 = arith.truncf %0 : vector<8x128xf32> to vector<8x128xbf16>
    %cst = arith.constant dense<0.000000e+00> : vector<8x128xf32>
    %5 = tpu.matmul %4, %2, %cst {dimension_numbers = #tpu.dot_dimension_numbers<[1], [0], [0], [1], [0, 0, 1, 1], [], []>} : vector<8x128xbf16>, vector<128x128xbf16>, vector<8x128xf32> -> vector<8x128xf32>
    %6 = vector.broadcast %3 : vector<1x128xf32> to vector<8x128xf32>
    %7 = arith.addf %5, %6 : vector<8x128xf32>
    %cst_6 = arith.constant 0.000000e+00 : f32
    %8 = vector.broadcast %cst_6 : f32 to vector<8x128xf32>
    %9 = arith.maximumf %7, %8 : vector<8x128xf32>
    %c1 = arith.constant 1 : index
    %c0_7 = arith.constant 0 : index
    %c0_8 = arith.constant 0 : index
    %10 = vector.load %arg2[%c1, %c0_7, %c0_8] : memref<4x128x128xbf16, #tpu.memory_space<vmem>>, vector<1x128x128xbf16>
    %11 = vector.shape_cast %10 : vector<1x128x128xbf16> to vector<128x128xbf16>
    %c1_9 = arith.constant 1 : index
    %c0_10 = arith.constant 0 : index
    %12 = vector.load %arg3[%c1_9, %c0_10] : memref<4x128xf32, #tpu.memory_space<vmem>>, vector<1x128xf32>
    %13 = arith.truncf %9 : vector<8x128xf32> to vector<8x128xbf16>
    %cst_11 = arith.constant dense<0.000000e+00> : vector<8x128xf32>
    %14 = tpu.matmul %13, %11, %cst_11 {dimension_numbers = #tpu.dot_dimension_numbers<[1], [0], [0], [1], [0, 0, 1, 1], [], []>} : vector<8x128xbf16>, vector<128x128xbf16>, vector<8x128xf32> -> vector<8x128xf32>
    %15 = vector.broadcast %12 : vector<1x128xf32> to vector<8x128xf32>
    %16 = arith.addf %14, %15 : vector<8x128xf32>
    %cst_12 = arith.constant 0.000000e+00 : f32
    %17 = vector.broadcast %cst_12 : f32 to vector<8x128xf32>
    %18 = arith.maximumf %16, %17 : vector<8x128xf32>
    %c2 = arith.constant 2 : index
    %c0_13 = arith.constant 0 : index
    %c0_14 = arith.constant 0 : index
    %19 = vector.load %arg2[%c2, %c0_13, %c0_14] : memref<4x128x128xbf16, #tpu.memory_space<vmem>>, vector<1x128x128xbf16>
    %20 = vector.shape_cast %19 : vector<1x128x128xbf16> to vector<128x128xbf16>
    %c2_15 = arith.constant 2 : index
    %c0_16 = arith.constant 0 : index
    %21 = vector.load %arg3[%c2_15, %c0_16] : memref<4x128xf32, #tpu.memory_space<vmem>>, vector<1x128xf32>
    %22 = arith.truncf %18 : vector<8x128xf32> to vector<8x128xbf16>
    %cst_17 = arith.constant dense<0.000000e+00> : vector<8x128xf32>
    %23 = tpu.matmul %22, %20, %cst_17 {dimension_numbers = #tpu.dot_dimension_numbers<[1], [0], [0], [1], [0, 0, 1, 1], [], []>} : vector<8x128xbf16>, vector<128x128xbf16>, vector<8x128xf32> -> vector<8x128xf32>
    %24 = vector.broadcast %21 : vector<1x128xf32> to vector<8x128xf32>
    %25 = arith.addf %23, %24 : vector<8x128xf32>
    %cst_18 = arith.constant 0.000000e+00 : f32
    %26 = vector.broadcast %cst_18 : f32 to vector<8x128xf32>
    %27 = arith.maximumf %25, %26 : vector<8x128xf32>
    %c3 = arith.constant 3 : index
    %c0_19 = arith.constant 0 : index
    %c0_20 = arith.constant 0 : index
    %28 = vector.load %arg2[%c3, %c0_19, %c0_20] : memref<4x128x128xbf16, #tpu.memory_space<vmem>>, vector<1x128x128xbf16>
    %29 = vector.shape_cast %28 : vector<1x128x128xbf16> to vector<128x128xbf16>
    %c3_21 = arith.constant 3 : index
    %c0_22 = arith.constant 0 : index
    %30 = vector.load %arg3[%c3_21, %c0_22] : memref<4x128xf32, #tpu.memory_space<vmem>>, vector<1x128xf32>
    %31 = arith.truncf %27 : vector<8x128xf32> to vector<8x128xbf16>
    %cst_23 = arith.constant dense<0.000000e+00> : vector<8x128xf32>
    %32 = tpu.matmul %31, %29, %cst_23 {dimension_numbers = #tpu.dot_dimension_numbers<[1], [0], [0], [1], [0, 0, 1, 1], [], []>} : vector<8x128xbf16>, vector<128x128xbf16>, vector<8x128xf32> -> vector<8x128xf32>
    %33 = vector.broadcast %30 : vector<1x128xf32> to vector<8x128xf32>
    %34 = arith.addf %32, %33 : vector<8x128xf32>
    %cst_24 = arith.constant 0.000000e+00 : f32
    %35 = vector.broadcast %cst_24 : f32 to vector<8x128xf32>
    %36 = arith.maximumf %34, %35 : vector<8x128xf32>
    %37 = vector.extract_strided_slice %36 {offsets = [0, 0], sizes = [8, 64], strides = [1, 1]} : vector<8x128xf32> to vector<8x64xf32>
    %c0_25 = arith.constant 0 : index
    %c0_26 = arith.constant 0 : index
    %38 = vector.load %arg4[%c0_25, %c0_26] : memref<8x64xf32, #tpu.memory_space<vmem>>, vector<8x64xf32>
    tpu.vector_store %arg4[%c0_25, %c0_26], %37 {strides = array<i32>} : memref<8x64xf32, #tpu.memory_space<vmem>>, vector<8x64xf32>,
    return
  }
  func.func @transform_0(%arg0: i32) -> (i32, i32) {
    %c0_i32 = arith.constant 0 : i32
    %c0_i32_0 = arith.constant 0 : i32
    return %arg0, %c0_i32 : i32, i32
  }
  func.func @transform_1(%arg0: i32) -> (i32, i32, i32) {
    %c0_i32 = arith.constant 0 : i32
    %c0_i32_0 = arith.constant 0 : i32
    %c0_i32_1 = arith.constant 0 : i32
    %c0_i32_2 = arith.constant 0 : i32
    return %c0_i32, %c0_i32_0, %c0_i32_1 : i32, i32, i32
  }
  func.func @transform_2(%arg0: i32) -> (i32, i32) {
    %c0_i32 = arith.constant 0 : i32
    %c0_i32_0 = arith.constant 0 : i32
    %c0_i32_1 = arith.constant 0 : i32
    return %c0_i32, %c0_i32_0 : i32, i32
  }
  func.func @transform_3(%arg0: i32) -> (i32, i32) {
    %c0_i32 = arith.constant 0 : i32
    %c0_i32_0 = arith.constant 0 : i32
    return %arg0, %c0_i32 : i32, i32
  }
}

</mosaic_0001>

<bundles_post_ra>
// kernel: tpu_custom_call.1
= control target key start
LH: loop header
LB: loop body
LE: loop exit
PB: predicated region body
PF: predicated region fallthrough
CT: control target
= control target key end

     0   :  { %8 = vsyncpa [#allocation3], 0  ;;  %s716_s0 = inlined_call_operand.hbm [shape: f32[8,128], index: 0, kind: input, shape index: {}]   ;;  %s717_s1 = inlined_call_operand.hbm [shape: bf16[4,128,128], index: 1, kind: input, shape index: {}]   ;;  %s718_s2 = inlined_call_operand.hbm [shape: f32[4,128], index: 2, kind: input, shape index: {}]   ;;  %s719_s3 = inlined_call_operand.hbm [shape: f32[8,64], index: 3, kind: output, shape index: {}]  }
   0x1   :  { %9 = vsyncpa [#allocation6], 0  ;;  %s26_s14 = sshll.u32 %s717_s1, 4  ;;  %s27_s14 = int_to_ptr.hbm [resolvable:$true] %s26_s14 }
   0x2   :  { %10 = vsyncpa [#allocation4], 0  ;;  %s678_s15 = smov [#allocation5]   ;;  %s16_s19 = sshll.u32 %s716_s0, 4  ;;  %s17_s19 = int_to_ptr.hbm [resolvable:$true] %s16_s19 }
   0x3   :  { %s28_s16 = sshll.u32 %s678_s15, 4  ;;  %s679_s20 = smov 64   ;;  %s29_s16 = int_to_ptr.vmem [resolvable:$true] %s28_s16 }
   0x4   :  { %s680_s21 = smov 4   ;;  %s681_s22 = smov [#allocation2]  }
   0x5   :  { %34 = dma.hbm_to_vmem [thread:$0]  %s27_s14, 4096, %s29_s16, [#allocation6], %s679_s20, %s679_s20, %s680_s21  }
   0x6   :  { %s18_s23 = sshll.u32 %s681_s22, 4  ;;  %s40_s26 = sshll.u32 %s718_s2, 4  ;;  %s19_s23 = int_to_ptr.vmem [resolvable:$true] %s18_s23  ;;  %s41_s26 = int_to_ptr.hbm [resolvable:$true] %s40_s26 }
   0x7   :  { %21 = dma.hbm_to_vmem [thread:$0]  %s17_s19, 128, %s19_s23, [#allocation3]  }
   0x8   :  { %s682_s1 = smov [#allocation7]  }
   0x9   :  { %s42_s27 = sshll.u32 %s682_s1, 4  ;;  %s43_s27 = int_to_ptr.vmem [resolvable:$true] %s42_s27 }
   0xa   :  { %45 = dma.hbm_to_vmem [thread:$0]  %s41_s26, 64, %s43_s27, [#allocation6]  }
   0xb   :  { %672 = dma.done.wait [#allocation3], 128  }
   0xc   :  { %673 = vsyncadd [#allocation3], 4294967168 }
   0xd   :  { %674 = dma.done.wait [#allocation6], 4160  }
   0xe   :  { %675 = vsyncadd [#allocation6], 4294963136  ;;  %v541_v0 = vld [vmem:[#allocation5 + $0x38] sm:$0xff]  ;;  %v540_v1 = vld [vmem:[#allocation5 + $0x30] sm:$0xff]  ;;  %s683_s0 = smov [#allocation8]   ;;  %s395_s30 = sshll.u32 %s719_s3, 4  ;;  %s396_s30 = int_to_ptr.hbm [resolvable:$true] %s395_s30 }
   0xf   :  { %126 = vmatpush.bf16.msra.mxu0 %v541_v0  ;;  %v549_v2 = vld [vmem:[#allocation5 + $0x78] sm:$0xff]  ;;  %v548_v3 = vld [vmem:[#allocation5 + $0x70] sm:$0xff]  ;;  %v539_v4 = vld [vmem:[#allocation5 + $0x28] sm:$0xff]  ;;  %s393_s2 = sshll.u32 %s683_s0, 4  ;;  %vm386_vm0 = vcmask 523264   ;;  %s394_s2 = int_to_ptr.vmem [resolvable:$true] %s393_s2 }
  0x10   :  { %208 = vmatpush.bf16.msra.mxu1 %v549_v2  ;;  %v547_v5 = vld [vmem:[#allocation5 + $0x68] sm:$0xff]  ;;  %v538_v6 = vld [vmem:[#allocation5 + $0x20] sm:$0xff]  ;;  %v537_v8 = vld [vmem:[#allocation5 + $0x18] sm:$0xff] }
  0x11   :  { %v546_v7 = vld [vmem:[#allocation5 + $0x60] sm:$0xff]  ;;  %v545_v9 = vld [vmem:[#allocation5 + $0x58] sm:$0xff]  ;;  %v536_v10 = vld [vmem:[#allocation5 + $0x10] sm:$0xff] }
  0x12   :  { %v544_v11 = vld [vmem:[#allocation5 + $0x50] sm:$0xff]  ;;  %v535_v12 = vld [vmem:[#allocation5 + $0x8] sm:$0xff]  ;;  %v534_v13 = vld [vmem:[#allocation5] sm:$0xff] }
  0x13   :  { %127 = vmatpush.bf16.msra.mxu0 %v540_v1  ;;  %v58_v14 = vld [vmem:[#allocation2] sm:$0xff]  ;;  %v543_v16 = vld [vmem:[#allocation5 + $0x48] sm:$0xff]  ;;  %v542_v17 = vld [vmem:[#allocation5 + $0x40] sm:$0xff] }
  0x14   :  { %209 = vmatpush.bf16.msra.mxu1 %v548_v3  ;;  %v76_v15 = vpack.c.bf16 %v58_v14, %v58_v14  ;;  %v557_v18 = vld [vmem:[#allocation5 + $0xb8] sm:$0xff]  ;;  %v556_v19 = vld [vmem:[#allocation5 + $0xb0] sm:$0xff]  ;;  %v555_v20 = vld [vmem:[#allocation5 + $0xa8] sm:$0xff] }
  0x15   :  { %290 = vmatpush.bf16.msra.mxu2 %v557_v18  ;;  %v554_v21 = vld [vmem:[#allocation5 + $0xa0] sm:$0xff]  ;;  %v553_v22 = vld [vmem:[#allocation5 + $0x98] sm:$0xff]  ;;  %v552_v23 = vld [vmem:[#allocation5 + $0x90] sm:$0xff] }
  0x16   :  { %v572_v24 = vld [vmem:[#allocation7] ss:$0 sm:$0xff]  ;;  %v551_v30 = vld [vmem:[#allocation5 + $0x88] sm:$0xff]  ;;  %v565_v32 = vld [vmem:[#allocation5 + $0xf8] sm:$0xff] }
  0x17   :  { %128 = vmatpush.bf16.msra.mxu0 %v539_v4  ;;  %v550_v31 = vld [vmem:[#allocation5 + $0x80] sm:$0xff]  ;;  %372 = vmatpush.bf16.msra.mxu3 %v565_v32  ;;  %v564_v33 = vld [vmem:[#allocation5 + $0xf0] sm:$0xff]  ;;  %v563_v34 = vld [vmem:[#allocation5 + $0xe8] sm:$0xff] }
  0x18   :  { %210 = vmatpush.bf16.msra.mxu1 %v547_v5  ;;  %v562_v35 = vld [vmem:[#allocation5 + $0xe0] sm:$0xff]  ;;  %v561_v36 = vld [vmem:[#allocation5 + $0xd8] sm:$0xff]  ;;  %v560_v37 = vld [vmem:[#allocation5 + $0xd0] sm:$0xff] }
  0x19   :  { %291 = vmatpush.bf16.msra.mxu2 %v556_v19  ;;  %v573_v38 = vld [vmem:[#allocation7 + $0x1] ss:$0 sm:$0xff]  ;;  %v559_v44 = vld [vmem:[#allocation5 + $0xc8] sm:$0xff]  ;;  %v574_v46 = vld [vmem:[#allocation7 + $0x2] ss:$0 sm:$0xff] }
  0x1a   :  { %v558_v45 = vld [vmem:[#allocation5 + $0xc0] sm:$0xff] }
  0x1b   :  { %129 = vmatpush.bf16.msra.mxu0 %v538_v6  ;;  %373 = vmatpush.bf16.msra.mxu3 %v564_v33  ;;  %v575_v52 = vld [vmem:[#allocation7 + $0x3] ss:$0 sm:$0xff] }
  0x1c   :  { %211 = vmatpush.bf16.msra.mxu1 %v546_v7 }
  0x1d   :  { %292 = vmatpush.bf16.msra.mxu2 %v555_v20 }
  0x1f   :  { %130 = vmatpush.bf16.msra.mxu0 %v537_v8  ;;  %374 = vmatpush.bf16.msra.mxu3 %v563_v34 }
  0x20   :  { %212 = vmatpush.bf16.msra.mxu1 %v545_v9 }
  0x21   :  { %293 = vmatpush.bf16.msra.mxu2 %v554_v21 }
  0x23   :  { %131 = vmatpush.bf16.msra.mxu0 %v536_v10  ;;  %375 = vmatpush.bf16.msra.mxu3 %v562_v35 }
  0x24   :  { %213 = vmatpush.bf16.msra.mxu1 %v544_v11 }
  0x25   :  { %294 = vmatpush.bf16.msra.mxu2 %v553_v22 }
  0x27   :  { %132 = vmatpush.bf16.msra.mxu0 %v535_v12  ;;  %376 = vmatpush.bf16.msra.mxu3 %v561_v36 }
  0x28   :  { %214 = vmatpush.bf16.msra.mxu1 %v543_v16 }
  0x29   :  { %295 = vmatpush.bf16.msra.mxu2 %v552_v23 }
  0x2b   :  { %133 = vmatpush.bf16.msra.mxu0 %v534_v13  ;;  %377 = vmatpush.bf16.msra.mxu3 %v560_v37 }
  0x2c   :  { %215 = vmatpush.bf16.msra.mxu1 %v542_v17 }
  0x2d   :  { %296 = vmatpush.bf16.msra.mxu2 %v551_v30 }
  0x2e   :  { %134 = vmatmul.bf16.vlgmr.msra.gmra.mxu0 %v76_v15 }
  0x2f   :  { %378 = vmatpush.bf16.msra.mxu3 %v559_v44 }
  0x31   :  { %297 = vmatpush.bf16.msra.mxu2 %v550_v31 }
  0x33   :  { %379 = vmatpush.bf16.msra.mxu3 %v558_v45 }
  0xab   :  { %v135_v25 = vpop.f32.mrf.mxu0 }
  0xac   :  { %v136_v26 = vadd.f32 %v572_v24, %v135_v25 }
  0xae   :  { %v139_v27 = vmax.f32 %v136_v26, 0.0 }
  0xb0   :  { %v158_v28 = vpack.c.bf16 %v139_v27, %v139_v27 }
  0xb2   :  { %216 = vmatmul.bf16.vlgmr.msra.gmra.mxu1 %v158_v28 }
  0xb3   :  { %v137_v29 = vpop.f32.mrf.mxu0 }
 0x12f   :  { %v217_v39 = vpop.f32.mrf.mxu1 }
 0x130   :  { %v218_v40 = vadd.f32 %v573_v38, %v217_v39 }
 0x132   :  { %v221_v41 = vmax.f32 %v218_v40, 0.0 }
 0x134   :  { %v240_v42 = vpack.c.bf16 %v221_v41, %v221_v41 }
 0x136   :  { %298 = vmatmul.bf16.vlgmr.msra.gmra.mxu2 %v240_v42 }
 0x137   :  { %v219_v43 = vpop.f32.mrf.mxu1 }
 0x1b9   :  { %v299_v47 = vpop.f32.mrf.mxu2 }
 0x1ba   :  { %v300_v48 = vadd.f32 %v574_v46, %v299_v47 }
 0x1bc   :  { %v303_v49 = vmax.f32 %v300_v48, 0.0 }
 0x1be   :  { %v322_v50 = vpack.c.bf16 %v303_v49, %v303_v49 }
 0x1c0   :  { %380 = vmatmul.bf16.vlgmr.msra.gmra.mxu3 %v322_v50 }
 0x1c1   :  { %v301_v51 = vpop.f32.mrf.mxu2 }
 0x243   :  { %v381_v53 = vpop.f32.mrf.mxu3 }
 0x244   :  { %v382_v54 = vadd.f32 %v575_v52, %v381_v53 }
 0x246   :  { %v385_v55 = vmax.f32 %v382_v54, 0.0 }
 0x248   :  { %387 = vst.msk [vmem:[#allocation8] sm:$0xff] %vm386_vm0, %v385_v55 }
 0x249   :  { %398 = dma.vmem_to_hbm [thread:$0]  %s394_s2, 128, %s396_s30, [#allocation4]  }
 0x24b   :  { %v383_v56 = vpop.f32.mrf.mxu3 }
 0x24c   :  { %676 = dma.done.wait [#allocation4], 128  }
 0x24d   :  { %677 = vsyncadd [#allocation4], 4294967168 }
 0x24e   :  { %403 = vsyncpa [#allocation3], 1 }
 0x24f   :  { %404 = vsyncpa [#allocation6], 1 }
 0x250   :  { %405 = vsyncpa [#allocation4], 1 }

</bundles_post_ra>
